<compile_context>
chip_gen: v7x
topology: tpu7x:2x2x1
jax: 0.10.0
libtpu: 0.0.40
codegen_flags: <defaults>
</compile_context>

<pallas_src>
import functools

import jax
import jax.numpy as jnp
import numpy as np
from jax.experimental import pallas as pl
from jax.experimental.pallas import tpu as pltpu


# ----------------------------------------------------------------------------
# Pallas kernel: fused cluster assignment + accumulation + EMA update
# ----------------------------------------------------------------------------
def _cluster_mean_kernel(eaf_ref, x_ref, rm_ref, csum_ref, ccnt_ref,
                         new_rm_ref, new_csum_ref, new_ccnt_ref,
                         *, class_num, num_features, batch, tile_b,
                         eps, count_threshold):
    i = pl.program_id(0)
    last = pl.num_programs(0) - 1

    # Carry the old pending sums/counts into the resident output accumulators.
    @pl.when(i == 0)
    def _init():
        new_csum_ref[...] = csum_ref[...]
        new_ccnt_ref[...] = ccnt_ref[...]

    x = x_ref[...]                                     # (TB, F) f32
    rm = rm_ref[...]                                   # (C,  F) f32

    # Nearest-cluster assignment via the MXU expansion of ||x - m + eps||^2:
    #     x.(x + 2eps) - 2 x.m + ||m - eps||^2
    # The first term is per-sample only -> cannot change the argmin -> dropped.
    g = jax.lax.dot_general(rm, x, (((1,), (1,)), ((), ())),
                            preferred_element_type=jnp.float32)     # (C, TB)
    m_eps = rm - eps
    per_class = jnp.sum(m_eps * m_eps, axis=-1, keepdims=True)      # (C, 1)
    score = per_class - 2.0 * g                                     # (C, TB)

    # First-minimum over the class (sublane) axis == np.argmin tie break.
    smin = jnp.min(score, axis=0, keepdims=True)                    # (1, TB)
    row = jax.lax.broadcasted_iota(jnp.int32, score.shape, 0).astype(jnp.float32)
    first_min = jnp.min(jnp.where(score == smin, row, float(class_num)),
                        axis=0, keepdims=True)                      # (1, TB)
    onehot = (row == first_min).astype(jnp.float32)                 # (C, TB)

    if batch % tile_b != 0:
        # Mask out the zero-padded rows of the ragged last tile.
        col = jax.lax.broadcasted_iota(jnp.int32, score.shape, 1)
        onehot = jnp.where(col + i * tile_b < batch, onehot, 0.0)

    # Scatter-add this tile into the per-class pending accumulators:
    # one (C,TB)@(TB,F) MXU matmul + a lane reduction for the counts.
    new_csum_ref[...] += jnp.dot(onehot, x, preferred_element_type=jnp.float32)
    new_ccnt_ref[...] += jnp.sum(onehot, axis=-1, keepdims=True)

    # Threshold / EMA / reset epilogue, once per forward (matches the reference:
    # the per-class check runs after the whole batch has been assigned).
    @pl.when(i == last)
    def _finalize():
        eaf = eaf_ref[0]                                            # SMEM scalar
        ns = new_csum_ref[...]                                      # (C, F)
        nc = new_ccnt_ref[...]                                      # (C, 1)
        # Reference quirk: torch.mean(torch.cat(samples, 0), 0) on a FLAT cat
        # -> a scalar per class, broadcast over the feature dim.
        flat_mean = jnp.sum(ns, axis=-1, keepdims=True) / (
            jnp.maximum(nc, 1.0) * float(num_features))             # (C, 1)
        do_update = nc > float(count_threshold)                     # (C, 1)
        new_rm_ref[...] = jnp.where(do_update,
                                    eaf * flat_mean + (1.0 - eaf) * rm, rm)
        new_csum_ref[...] = jnp.where(do_update, 0.0, ns)
        new_ccnt_ref[...] = jnp.where(do_update, 0.0, nc)


# ----------------------------------------------------------------------------
# functional module wrapper
# ----------------------------------------------------------------------------
def init_state(num_features, class_num=7, static_mean=None):
    """Mirrors the register_buffer init (and the module's .init(static_mean))."""
    if static_mean is None:
        running_mean = jnp.zeros((class_num, num_features), jnp.float32)
    else:
        running_mean = jnp.asarray(static_mean, jnp.float32)
    return {
        "running_mean": running_mean,
        "cluster_sum": jnp.zeros((class_num, num_features), jnp.float32),
        "cluster_count": jnp.zeros((class_num, 1), jnp.float32),
        "num_batches_tracked": jnp.zeros((), jnp.int32),
    }


def count_mean_forward(x, state, *, class_num=7, momentum=0.1,
                       track_running_stats=True, training=True,
                       eps=1e-6, count_threshold=32, max_batch_tile=256):
    """Functional CountMeanOfFeatureInCluster.forward: returns (input, new_state)."""
    assert training, "Use CountMeanOfFreatureInCluster in eval mode."
    if not track_running_stats:
        return x, state

    num_batches_tracked = state["num_batches_tracked"] + 1
    if momentum is None:
        eaf = (1.0 / num_batches_tracked.astype(jnp.float32)).reshape(1)
    else:
        eaf = jnp.full((1,), momentum, jnp.float32)

    data = jax.lax.stop_gradient(x).astype(jnp.float32)   # input.clone().detach()
    batch, num_features = data.shape

    # Batch-tiled grid; TB=256 keeps double-buffered x tiles well inside VMEM
    # on all generations (incl. v7x's 64 MiB physical / 32 MiB scoped budget).
    tile_b = batch if batch <= max_batch_tile else max_batch_tile
    num_tiles = pl.cdiv(batch, tile_b)
    padded_batch = num_tiles * tile_b
    if padded_batch != batch:
        data = jnp.pad(data, ((0, padded_batch - batch), (0, 0)))

    kernel = functools.partial(
        _cluster_mean_kernel, class_num=class_num, num_features=num_features,
        batch=batch, tile_b=tile_b, eps=eps, count_threshold=count_threshold)

    flops = int(4 * padded_batch * class_num * num_features
                + 6 * class_num * num_features)
    bytes_accessed = int(4 * (padded_batch * num_features
                              + 4 * class_num * num_features
                              + 4 * class_num + 1))

    new_rm, new_sum, new_cnt = pl.pallas_call(
        kernel,
        grid=(num_tiles,),
        in_specs=[
            pl.BlockSpec(memory_space=pltpu.MemorySpace.SMEM),         # eaf scalar
            pl.BlockSpec((tile_b, num_features), lambda i: (i, 0)),    # x tile
            pl.BlockSpec((class_num, num_features), lambda i: (0, 0)),  # running_mean
            pl.BlockSpec((class_num, num_features), lambda i: (0, 0)),  # cluster_sum
            pl.BlockSpec((class_num, 1), lambda i: (0, 0)),             # cluster_count
        ],
        out_specs=[
            pl.BlockSpec((class_num, num_features), lambda i: (0, 0)),
            pl.BlockSpec((class_num, num_features), lambda i: (0, 0)),
            pl.BlockSpec((class_num, 1), lambda i: (0, 0)),
        ],
        out_shape=(
            jax.ShapeDtypeStruct((class_num, num_features), jnp.float32),
            jax.ShapeDtypeStruct((class_num, num_features), jnp.float32),
            jax.ShapeDtypeStruct((class_num, 1), jnp.float32),
        ),
        # running_mean -> new_rm, cluster_sum -> new_csum, cluster_count -> new_ccnt
        input_output_aliases={2: 0, 3: 1, 4: 2},
        compiler_params=pltpu.CompilerParams(
            dimension_semantics=("arbitrary",)),
        cost_estimate=pl.CostEstimate(flops=flops, transcendentals=0,
                                      bytes_accessed=bytes_accessed),
    )(eaf, data, state["running_mean"], state["cluster_sum"],
      state["cluster_count"])

    new_state = {
        "running_mean": new_rm,
        "cluster_sum": new_sum,
        "cluster_count": new_cnt,
        "num_batches_tracked": num_batches_tracked,
    }
    return x, new_state   # forward returns the input unchanged


# ----------------------------------------------------------------------------
# literal (PyTorch-semantics) numpy reference, for verification only
# ----------------------------------------------------------------------------
def _reference_step(data_np, rm_np, clusters, eaf, *, eps=1e-6, thresh=32):
    rm = rm_np.copy()
    clusters = [list(c) for c in clusters]
    class_num = rm.shape[0]
    for b in range(data_np.shape[0]):
        dist = np.array([np.sqrt(np.sum((data_np[b] - rm[c] + eps) ** 2))
                         for c in range(class_num)])
        clusters[int(np.argmin(dist))].append(data_np[b])
    for c in range(class_num):
        if len(clusters[c]) > thresh:
            flat = np.concatenate(clusters[c], 0)
            rm[c] = eaf * flat.mean() + (1.0 - eaf) * rm[c]
            clusters[c] = []
    return rm, clusters


# ----------------------------------------------------------------------------
# main
# ----------------------------------------------------------------------------
if __name__ == "__main__":
    B, F, C = 8, 128, 7        # batch, num_features, class_num

    key = jax.random.PRNGKey(0)
    k_mean, k_label, k_big, key = jax.random.split(key, 4)

    # Seed per-class running means via the module's .init(static_mean) path
    # (all-zero means would make every distance identical -> degenerate demo).
    static_mean = jax.random.normal(k_mean, (C, F), jnp.float32)
    state = init_state(F, class_num=C, static_mean=static_mean)

    # numpy mirror of the PyTorch module's list-based buffers, for verification
    ref_rm = np.asarray(static_mean, np.float32).copy()
    ref_clusters = [[] for _ in range(C)]

    step = jax.jit(functools.partial(count_mean_forward, class_num=C, momentum=0.1))

    # Several training-mode forwards concentrated near cluster 0 so the
    # >32-sample EMA-update + reset path is exercised (8 samples x 5 = 40 > 32).
    out = x = None
    for _ in range(6):
        key, k = jax.random.split(key)
        x = jax.random.normal(k, (B, F), jnp.float32) + static_mean[0]
        out, state = step(x, state)
        ref_rm, ref_clusters = _reference_step(np.asarray(x, np.float32),
                                               ref_rm, ref_clusters, 0.1)

    # One larger batch (272 > tile of 256) exercises the batch-tiled grid and
    # the ragged-last-tile mask; samples are tight around random class means.
    labels = jax.random.randint(k_label, (272,), 0, C)
    x_big = (0.3 * jax.random.normal(k_big, (272, F), jnp.float32)
             + static_mean[labels])
    out_big, state = step(x_big, state)
    ref_rm, ref_clusters = _reference_step(np.asarray(x_big, np.float32),
                                           ref_rm, ref_clusters, 0.1)

    out, out_big, state = jax.block_until_ready((out, out_big, state))

    # forward is a pass-through
    assert out.shape == (B, F) and bool(jnp.all(out == x))
    assert out_big.shape == (272, F) and bool(jnp.all(out_big == x_big))
    assert state["running_mean"].shape == (C, F)
    assert state["cluster_sum"].shape == (C, F)
    assert state["cluster_count"].shape == (C, 1)
    assert int(state["num_batches_tracked"]) == 7
    # any cluster that crosses the threshold is reset within the same forward
    assert bool(jnp.all(state["cluster_count"] <= 32.0))
    assert bool(jnp.all(jnp.isfinite(state["running_mean"])))

    # match the literal PyTorch-semantics reference
    ref_cnt = np.array([[float(len(c))] for c in ref_clusters], np.float32)
    ref_sum = np.stack([np.sum(np.stack(c), 0) if c else np.zeros(F, np.float32)
                        for c in ref_clusters]).astype(np.float32)
    np.testing.assert_allclose(np.asarray(state["running_mean"]), ref_rm,
                               rtol=1e-4, atol=1e-4)
    np.testing.assert_allclose(np.asarray(state["cluster_count"]), ref_cnt,
                               rtol=0, atol=1e-3)
    np.testing.assert_allclose(np.asarray(state["cluster_sum"]), ref_sum,
                               rtol=1e-4, atol=1e-3)

    print("KERNEL_OK")
</pallas_src>

<mosaic_0001>
module attributes {stable_mosaic.version = 11 : i64} {
  func.func @_cluster_mean_kernel(%arg0: i32, %arg1: memref<1xf32, #tpu.memory_space<smem>>, %arg2: memref<8x128xf32, #tpu.memory_space<vmem>>, %arg3: memref<7x128xf32, #tpu.memory_space<vmem>>, %arg4: memref<7x128xf32, #tpu.memory_space<vmem>>, %arg5: memref<7x1xf32, #tpu.memory_space<vmem>>, %arg6: memref<7x128xf32, #tpu.memory_space<vmem>>, %arg7: memref<7x128xf32, #tpu.memory_space<vmem>>, %arg8: memref<7x1xf32, #tpu.memory_space<vmem>>) attributes {dimension_semantics = [#tpu.dimension_semantics<arbitrary>], iteration_bounds = array<i64: 1>, scalar_prefetch = 0 : i64, scratch_operands = 0 : i64, tpu.core_type = #tpu.core_type<tc>, window_params = [{transform_indices = @transform_0, window_bounds = array<i64: 1>}, {transform_indices = @transform_1, window_bounds = array<i64: 8, 128>}, {pipeline_mode = #tpu.pipeline_mode<synchronous>, transform_indices = @transform_2, window_bounds = array<i64: 7, 128>}, {pipeline_mode = #tpu.pipeline_mode<synchronous>, transform_indices = @transform_3, window_bounds = array<i64: 7, 128>}, {pipeline_mode = #tpu.pipeline_mode<synchronous>, transform_indices = @transform_4, window_bounds = array<i64: 7, 1>}, {pipeline_mode = #tpu.pipeline_mode<synchronous>, transform_indices = @transform_5, window_bounds = array<i64: 7, 128>}, {pipeline_mode = #tpu.pipeline_mode<synchronous>, transform_indices = @transform_6, window_bounds = array<i64: 7, 128>}, {pipeline_mode = #tpu.pipeline_mode<synchronous>, transform_indices = @transform_7, window_bounds = array<i64: 7, 1>}]} {
    %c0_i32 = arith.constant 0 : i32
    %0 = arith.cmpi eq, %arg0, %c0_i32 : i32
    %1 = arith.extui %0 : i1 to i32
    %c0_i32_0 = arith.constant 0 : i32
    %2 = arith.cmpi ne, %1, %c0_i32_0 : i32
    scf.if %2 {
      %c0_22 = arith.constant 0 : index
      %c0_23 = arith.constant 0 : index
      %41 = vector.load %arg4[%c0_22, %c0_23] : memref<7x128xf32, #tpu.memory_space<vmem>>, vector<7x128xf32>
      %c0_24 = arith.constant 0 : index
      %c0_25 = arith.constant 0 : index
      %42 = vector.load %arg7[%c0_24, %c0_25] : memref<7x128xf32, #tpu.memory_space<vmem>>, vector<7x128xf32>
      tpu.vector_store %arg7[%c0_24, %c0_25], %41 {strides = array<i32>} : memref<7x128xf32, #tpu.memory_space<vmem>>, vector<7x128xf32>,
      %c0_26 = arith.constant 0 : index
      %c0_27 = arith.constant 0 : index
      %43 = vector.load %arg5[%c0_26, %c0_27] : memref<7x1xf32, #tpu.memory_space<vmem>>, vector<7x1xf32>
      %c0_28 = arith.constant 0 : index
      %c0_29 = arith.constant 0 : index
      %44 = vector.load %arg8[%c0_28, %c0_29] : memref<7x1xf32, #tpu.memory_space<vmem>>, vector<7x1xf32>
      tpu.vector_store %arg8[%c0_28, %c0_29], %43 {strides = array<i32>} : memref<7x1xf32, #tpu.memory_space<vmem>>, vector<7x1xf32>,
    } else {
    }
    %c0 = arith.constant 0 : index
    %c0_1 = arith.constant 0 : index
    %3 = vector.load %arg2[%c0, %c0_1] : memref<8x128xf32, #tpu.memory_space<vmem>>, vector<8x128xf32>
    %c0_2 = arith.constant 0 : index
    %c0_3 = arith.constant 0 : index
    %4 = vector.load %arg3[%c0_2, %c0_3] : memref<7x128xf32, #tpu.memory_space<vmem>>, vector<7x128xf32>
    %cst = arith.constant dense<0.000000e+00> : vector<7x8xf32>
    %5 = tpu.matmul %4, %3, %cst {dimension_numbers = #tpu.dot_dimension_numbers<[1], [1], [0], [0], [0, 0, 1, 0], [], []>} : vector<7x128xf32>, vector<8x128xf32>, vector<7x8xf32> -> vector<7x8xf32>
    %cst_4 = arith.constant 9.99999997E-7 : f32
    %6 = vector.broadcast %cst_4 : f32 to vector<7x128xf32>
    %7 = arith.subf %4, %6 : vector<7x128xf32>
    %8 = arith.mulf %7, %7 : vector<7x128xf32>
    %cst_5 = arith.constant dense<0.000000e+00> : vector<7xf32>
    %9 = vector.multi_reduction <add>, %8, %cst_5 [1] : vector<7x128xf32> to vector<7xf32>
    %10 = vector.shape_cast %9 : vector<7xf32> to vector<7x1xf32>
    %cst_6 = arith.constant 2.000000e+00 : f32
    %11 = vector.broadcast %cst_6 : f32 to vector<7x8xf32>
    %12 = arith.mulf %11, %5 : vector<7x8xf32>
    %13 = vector.broadcast %10 : vector<7x1xf32> to vector<7x8xf32>
    %14 = arith.subf %13, %12 : vector<7x8xf32>
    %cst_7 = arith.constant dense<0x7F800000> : vector<8xf32>
    %15 = vector.multi_reduction <minimumf>, %14, %cst_7 [0] : vector<7x8xf32> to vector<8xf32>
    %16 = vector.shape_cast %15 : vector<8xf32> to vector<1x8xf32>
    %17 = tpu.iota {dimensions = array<i32: 0>} : vector<7x8xi32>
    %18 = arith.sitofp %17 : vector<7x8xi32> to vector<7x8xf32>
    %19 = vector.broadcast %16 : vector<1x8xf32> to vector<7x8xf32>
    %20 = arith.cmpf oeq, %14, %19 : vector<7x8xf32>
    %cst_8 = arith.constant 7.000000e+00 : f32
    %21 = vector.broadcast %cst_8 : f32 to vector<7x8xf32>
    %22 = arith.select %20, %18, %21 : vector<7x8xi1>, vector<7x8xf32>
    %cst_9 = arith.constant dense<0x7F800000> : vector<8xf32>
    %23 = vector.multi_reduction <minimumf>, %22, %cst_9 [0] : vector<7x8xf32> to vector<8xf32>
    %24 = vector.shape_cast %23 : vector<8xf32> to vector<1x8xf32>
    %25 = vector.broadcast %24 : vector<1x8xf32> to vector<7x8xf32>
    %26 = arith.cmpf oeq, %18, %25 : vector<7x8xf32>
    %27 = arith.extui %26 : vector<7x8xi1> to vector<7x8xi32>
    %28 = arith.sitofp %27 : vector<7x8xi32> to vector<7x8xf32>
    %c0_10 = arith.constant 0 : index
    %c0_11 = arith.constant 0 : index
    %29 = vector.load %arg7[%c0_10, %c0_11] : memref<7x128xf32, #tpu.memory_space<vmem>>, vector<7x128xf32>
    %cst_12 = arith.constant dense<0.000000e+00> : vector<7x128xf32>
    %30 = tpu.matmul %28, %3, %cst_12 {dimension_numbers = #tpu.dot_dimension_numbers<[1], [0], [0], [1], [0, 0, 1, 1], [], []>} : vector<7x8xf32>, vector<8x128xf32>, vector<7x128xf32> -> vector<7x128xf32>
    %31 = arith.addf %29, %30 : vector<7x128xf32>
    %c0_13 = arith.constant 0 : index
    %c0_14 = arith.constant 0 : index
    %32 = vector.load %arg7[%c0_13, %c0_14] : memref<7x128xf32, #tpu.memory_space<vmem>>, vector<7x128xf32>
    tpu.vector_store %arg7[%c0_13, %c0_14], %31 {strides = array<i32>} : memref<7x128xf32, #tpu.memory_space<vmem>>, vector<7x128xf32>,
    %c0_15 = arith.constant 0 : index
    %c0_16 = arith.constant 0 : index
    %33 = vector.load %arg8[%c0_15, %c0_16] : memref<7x1xf32, #tpu.memory_space<vmem>>, vector<7x1xf32>
    %cst_17 = arith.constant dense<0.000000e+00> : vector<7xf32>
    %34 = vector.multi_reduction <add>, %28, %cst_17 [1] : vector<7x8xf32> to vector<7xf32>
    %35 = vector.shape_cast %34 : vector<7xf32> to vector<7x1xf32>
    %36 = arith.addf %33, %35 : vector<7x1xf32>
    %c0_18 = arith.constant 0 : index
    %c0_19 = arith.constant 0 : index
    %37 = vector.load %arg8[%c0_18, %c0_19] : memref<7x1xf32, #tpu.memory_space<vmem>>, vector<7x1xf32>
    tpu.vector_store %arg8[%c0_18, %c0_19], %36 {strides = array<i32>} : memref<7x1xf32, #tpu.memory_space<vmem>>, vector<7x1xf32>,
    %c0_i32_20 = arith.constant 0 : i32
    %38 = arith.cmpi eq, %arg0, %c0_i32_20 : i32
    %39 = arith.extui %38 : i1 to i32
    %c0_i32_21 = arith.constant 0 : i32
    %40 = arith.cmpi ne, %39, %c0_i32_21 : i32
    scf.if %40 {
      %c0_22 = arith.constant 0 : index
      %41 = memref.load %arg1[%c0_22] : memref<1xf32, #tpu.memory_space<smem>>
      %c0_23 = arith.constant 0 : index
      %c0_24 = arith.constant 0 : index
      %42 = vector.load %arg7[%c0_23, %c0_24] : memref<7x128xf32, #tpu.memory_space<vmem>>, vector<7x128xf32>
      %c0_25 = arith.constant 0 : index
      %c0_26 = arith.constant 0 : index
      %43 = vector.load %arg8[%c0_25, %c0_26] : memref<7x1xf32, #tpu.memory_space<vmem>>, vector<7x1xf32>
      %cst_27 = arith.constant dense<0.000000e+00> : vector<7xf32>
      %44 = vector.multi_reduction <add>, %42, %cst_27 [1] : vector<7x128xf32> to vector<7xf32>
      %45 = vector.shape_cast %44 : vector<7xf32> to vector<7x1xf32>
      %cst_28 = arith.constant 1.000000e+00 : f32
      %46 = vector.broadcast %cst_28 : f32 to vector<7x1xf32>
      %47 = arith.maximumf %43, %46 : vector<7x1xf32>
      %cst_29 = arith.constant 1.280000e+02 : f32
      %48 = vector.broadcast %cst_29 : f32 to vector<7x1xf32>
      %49 = arith.mulf %47, %48 : vector<7x1xf32>
      %50 = arith.divf %45, %49 : vector<7x1xf32>
      %cst_30 = arith.constant 3.200000e+01 : f32
      %51 = vector.broadcast %cst_30 : f32 to vector<7x1xf32>
      %52 = arith.cmpf ogt, %43, %51 : vector<7x1xf32>
      %53 = vector.broadcast %41 : f32 to vector<7x1xf32>
      %54 = arith.mulf %53, %50 : vector<7x1xf32>
      %cst_31 = arith.constant 1.000000e+00 : f32
      %55 = arith.subf %cst_31, %41 : f32
      %56 = vector.broadcast %55 : f32 to vector<7x128xf32>
      %57 = arith.mulf %56, %4 : vector<7x128xf32>
      %58 = vector.broadcast %54 : vector<7x1xf32> to vector<7x128xf32>
      %59 = arith.addf %58, %57 : vector<7x128xf32>
      %60 = vector.shape_cast %52 : vector<7x1xi1> to vector<7x1xi1>
      %61 = vector.broadcast %60 : vector<7x1xi1> to vector<7x128xi1>
      %62 = arith.select %61, %59, %4 : vector<7x128xi1>, vector<7x128xf32>
      %c0_32 = arith.constant 0 : index
      %c0_33 = arith.constant 0 : index
      %63 = vector.load %arg6[%c0_32, %c0_33] : memref<7x128xf32, #tpu.memory_space<vmem>>, vector<7x128xf32>
      tpu.vector_store %arg6[%c0_32, %c0_33], %62 {strides = array<i32>} : memref<7x128xf32, #tpu.memory_space<vmem>>, vector<7x128xf32>,
      %cst_34 = arith.constant 0.000000e+00 : f32
      %64 = vector.shape_cast %52 : vector<7x1xi1> to vector<7x1xi1>
      %65 = vector.broadcast %64 : vector<7x1xi1> to vector<7x128xi1>
      %66 = vector.broadcast %cst_34 : f32 to vector<7x128xf32>
      %67 = arith.select %65, %66, %42 : vector<7x128xi1>, vector<7x128xf32>
      %c0_35 = arith.constant 0 : index
      %c0_36 = arith.constant 0 : index
      %68 = vector.load %arg7[%c0_35, %c0_36] : memref<7x128xf32, #tpu.memory_space<vmem>>, vector<7x128xf32>
      tpu.vector_store %arg7[%c0_35, %c0_36], %67 {strides = array<i32>} : memref<7x128xf32, #tpu.memory_space<vmem>>, vector<7x128xf32>,
      %cst_37 = arith.constant 0.000000e+00 : f32
      %69 = vector.broadcast %cst_37 : f32 to vector<7x1xf32>
      %70 = arith.select %52, %69, %43 : vector<7x1xi1>, vector<7x1xf32>
      %c0_38 = arith.constant 0 : index
      %c0_39 = arith.constant 0 : index
      %71 = vector.load %arg8[%c0_38, %c0_39] : memref<7x1xf32, #tpu.memory_space<vmem>>, vector<7x1xf32>
      tpu.vector_store %arg8[%c0_38, %c0_39], %70 {strides = array<i32>} : memref<7x1xf32, #tpu.memory_space<vmem>>, vector<7x1xf32>,
    } else {
    }
    return
  }
  func.func @transform_0(%arg0: i32) -> i32 {
    %c0_i32 = arith.constant 0 : i32
    %c0_i32_0 = arith.constant 0 : i32
    return %c0_i32 : i32
  }
  func.func @transform_1(%arg0: i32) -> (i32, i32) {
    %c0_i32 = arith.constant 0 : i32
    %c0_i32_0 = arith.constant 0 : i32
    return %arg0, %c0_i32 : i32, i32
  }
  func.func @transform_2(%arg0: i32) -> (i32, i32) {
    %c0_i32 = arith.constant 0 : i32
    %c0_i32_0 = arith.constant 0 : i32
    %c0_i32_1 = arith.constant 0 : i32
    return %c0_i32, %c0_i32_0 : i32, i32
  }
  func.func @transform_3(%arg0: i32) -> (i32, i32) {
    %c0_i32 = arith.constant 0 : i32
    %c0_i32_0 = arith.constant 0 : i32
    %c0_i32_1 = arith.constant 0 : i32
    return %c0_i32, %c0_i32_0 : i32, i32
  }
  func.func @transform_4(%arg0: i32) -> (i32, i32) {
    %c0_i32 = arith.constant 0 : i32
    %c0_i32_0 = arith.constant 0 : i32
    %c0_i32_1 = arith.constant 0 : i32
    return %c0_i32, %c0_i32_0 : i32, i32
  }
  func.func @transform_5(%arg0: i32) -> (i32, i32) {
    %c0_i32 = arith.constant 0 : i32
    %c0_i32_0 = arith.constant 0 : i32
    %c0_i32_1 = arith.constant 0 : i32
    return %c0_i32, %c0_i32_0 : i32, i32
  }
  func.func @transform_6(%arg0: i32) -> (i32, i32) {
    %c0_i32 = arith.constant 0 : i32
    %c0_i32_0 = arith.constant 0 : i32
    %c0_i32_1 = arith.constant 0 : i32
    return %c0_i32, %c0_i32_0 : i32, i32
  }
  func.func @transform_7(%arg0: i32) -> (i32, i32) {
    %c0_i32 = arith.constant 0 : i32
    %c0_i32_0 = arith.constant 0 : i32
    %c0_i32_1 = arith.constant 0 : i32
    return %c0_i32, %c0_i32_0 : i32, i32
  }
}

</mosaic_0001>

<bundles_post_ra>
// kernel: count_mean_forward.1
= control target key start
LH: loop header
LB: loop body
LE: loop exit
PB: predicated region body
PF: predicated region fallthrough
CT: control target
= control target key end

     0   :  { %v292_v0 = vmov 0.0   ;;  %vm293_vm0 = vmmov 0   ;;  %vm107_vm1 = vcmask 1046528   ;;  %vm31_vm2 = vcmask 6144   ;;  %s402_s1 = inlined_call_operand.vmem [shape: f32[8,128], index: 1, kind: input, shape index: {}]   ;;  %s403_s2 = inlined_call_operand.vmem [shape: f32[7,128], index: 2, kind: input, shape index: {}, may-alias: {2,5}]   ;;  %s404_s4 = inlined_call_operand.vmem [shape: f32[7,1], index: 4, kind: input, shape index: {}, may-alias: {4,7}]   ;;  %s405_s7 = inlined_call_operand.vmem [shape: f32[7,1], index: 7, kind: output, shape index: {2}, may-alias: {4,7}]   ;;  %s406_s3 = inlined_call_operand.vmem [shape: f32[7,128], index: 3, kind: input, shape index: {}, may-alias: {3,6}]   ;;  %s407_s6 = inlined_call_operand.vmem [shape: f32[7,128], index: 6, kind: output, shape index: {1}, may-alias: {3,6}]   ;;  %s408_s0 = inlined_call_operand.<no memory space> [shape: f32[1], index: 0, kind: input, shape index: {}]   ;;  %s409_s5 = inlined_call_operand.vmem [shape: f32[7,128], index: 5, kind: output, shape index: {0}, may-alias: {2,5}]  }
   0x1   :  { %275 = vmatprep.subr.mxu0 %v292_v0  ;;  %v33_v1 = vld [vmem:[%s402_s1] sm:$0xff]  ;;  %277 = vmatprep.mubr.msk.f32.mxu0 %vm293_vm0, %v292_v0  ;;  %vm113_vm3 = vcmask 63488   ;;  %v121_v14 = vlaneseq  ;;  %vm137_vm5 = vcmask 64512   ;;  %v294_v32 = vmov 0   ;;  %s236_s1 = ssub.f32 1.0, %s408_s0 }
   0x2   :  { %v341_v2 = vld [vmem:[%s403_s2] sm:$0x7f]  ;;  %276 = vmatpush3.xpose.msra.mxu0 %v33_v1  ;;  %280 = vmatprep.subr.mxu1 %v292_v0  ;;  %v234_v52 = vstv %s408_s0 }
   0x3   :  { %v268_v3 = vadd.f32 -1e-06, %v341_v2  ;;  %281 = vmatpush3.msra.mxu1 %v33_v1  ;;  %282 = vmatprep.mubr.msk.f32.mxu1 %vm293_vm0, %v292_v0  ;;  %v30_v6 = vld [vmem:[%s404_s4] sm:$0x7f]  ;;  %v122_v17 = vshrl.u32 %v121_v14, 7  ;;  %v237_v55 = vstv %s236_s1 }
   0x4   :  { %32 = vst.msk [vmem:[%s405_s7] sm:$0x7f] %vm31_vm2, %v30_v6  ;;  %289 = vset.pattern.permute.xlu0 %v294_v32  ;;  %288 = vset.pattern.permute.xlu1 %v294_v32  ;;  %v28_v33 = vld [vmem:[%s406_s3] sm:$0x7f]  ;;  %v238_v56 = vmul.f32 %v237_v55, %v341_v2 }
   0x5   :  { %v106_v4 = vmul.f32 %v268_v3, %v268_v3  ;;  %278 = vmatmul.mubr.f32.vlgmr.msra.gmra.mrb[0].mxu0 %v341_v2  ;;  %v123_v20 = vcvt.s32.f32 %v122_v17  ;;  %29 = vst [vmem:[%s407_s6] sm:$0x7f] %v28_v33 }
   0x7   :  { %v108_v5 = vsel %vm107_vm1, %v106_v4, 0.0 }
   0x8   :  { %109 = vadd.xlane.f32.xlu0 %v108_v5 }
   0xb   :  { %v213_v34 = vld [vmem:[%s405_s7] sm:$0x7f] }
   0xc   :  { %v136_v40 = vld [vmem:[%s407_s6] sm:$0x7f] }
  0x95   :  { %v110_v8 = vpop.xlane.xlu0 %109 }
  0xd8   :  { %v101_v7 = vpop.f32.mrb[0].mxu0 }
  0xd9   :  { %v111_v9 = vmul.f32 2.0, %v101_v7  ;;  %v279_v10 = vpop.f32.mrb[1].mxu0 }
  0xdb   :  { %v112_v11 = vsub.f32 %v110_v8, %v111_v9 }
  0xdd   :  { %v114_v12 = vsel %vm113_vm3, %v112_v11, inf }
  0xde   :  { %v115_v13 = vrot.slane %v114_v12, 4 }
  0xe0   :  { %v116_v15 = vmin.f32 %v114_v12, %v115_v13 }
  0xe2   :  { %v117_v16 = vrot.slane %v116_v15, 2 }
  0xe4   :  { %v118_v18 = vmin.f32 %v116_v15, %v117_v16 }
  0xe6   :  { %v119_v19 = vrot.slane %v118_v18, 1 }
  0xe8   :  { %v120_v21 = vmin.f32 %v118_v18, %v119_v19 }
  0xea   :  { %vm124_vm4 = vcmp.eq.f32.partialorder %v112_v11, %v120_v21 }
  0xeb   :  { %v125_v22 = vsel %vm124_vm4, %v123_v20, 7.0 }
  0xec   :  { %v126_v23 = vsel %vm113_vm3, %v125_v22, inf }
  0xed   :  { %v127_v24 = vrot.slane %v126_v23, 4 }
  0xef   :  { %v128_v25 = vmin.f32 %v126_v23, %v127_v24 }
  0xf1   :  { %v129_v26 = vrot.slane %v128_v25, 2 }
  0xf3   :  { %v130_v27 = vmin.f32 %v128_v25, %v129_v26 }
  0xf5   :  { %v131_v28 = vrot.slane %v130_v27, 1 }
  0xf7   :  { %v132_v29 = vmin.f32 %v130_v27, %v131_v28 }
  0xf9   :  { %vm133_vm6 = vcmp.eq.f32.partialorder %v123_v20, %v132_v29 }
  0xfa   :  { %v269_v30 = vsel %vm133_vm6, 1.0, %v292_v0 }
  0xfb   :  { %283 = vmatmul.mubr.msk.f32.vlgmr.msra.gmra.mrb[0].mxu1 %vm137_vm5, %v269_v30  ;;  %v214_v31 = vsel %vm113_vm3, %v269_v30, 0.0 }
  0xfc   :  { %215 = vadd.xlane.f32.xlu0 %v214_v31 }
 0x189   :  { %v216_v35 = vpop.xlane.xlu0 %215 }
 0x18a   :  { %v217_v36 = vadd.f32 %v216_v35, %v213_v34 }
 0x18c   :  { %219 = vst.msk [vmem:[%s405_s7] sm:$0x7f] %vm31_vm2, %v217_v36 }
 0x193   :  { %v225_v37 = vld [vmem:[%s405_s7] sm:$0x7f] }
 0x194   :  { %vm233_vm7 = vcmp.gt.f32.partialorder %v225_v37, 32.0  ;;  %v229_v48 = vmax.f32 %v225_v37, 1.0 }
 0x195   :  { %v245_v38 = vsel %vm233_vm7, 1, %v294_v32  ;;  %v254_v39 = vsel %vm233_vm7, 0.0, %v225_v37 }
 0x196   :  { %255 = vst.msk [vmem:[%s405_s7] sm:$0x7f] %vm31_vm2, %v254_v39  ;;  %247 = vperm.xlu0 %289, %v245_v38   ;;  %v230_v49 = vmul.f32 128.0, %v229_v48 }
 0x198   :  { %290 = vrcp.f32 %v230_v49 }
 0x1a2   :  { %v291_v50 = vpop.eup %290 }
 0x1ce   :  { %v207_v41 = vpop.f32.mrb[0].mxu1 }
 0x1cf   :  { %v211_v42 = vadd.f32 %v207_v41, %v136_v40  ;;  %v284_v43 = vpop.f32.mrb[1].mxu1 }
 0x1d1   :  { %212 = vst [vmem:[%s407_s6] sm:$0x7f] %v211_v42 }
 0x1d8   :  { %v224_v44 = vld [vmem:[%s407_s6] sm:$0x7f] }
 0x1d9   :  { %v226_v45 = vsel %vm107_vm1, %v224_v44, 0.0 }
 0x1da   :  { %227 = vadd.xlane.f32.xlu1 %v226_v45 }
 0x215   :  { %v248_v46 = vpop.permute.xlu0 %247 }
 0x216   :  { %vm249_vm8 = vcmp.eq.s32.totalorder %v248_v46, 1 }
 0x217   :  { %v252_v47 = vsel %vm249_vm8, 0.0, %v224_v44 }
 0x218   :  { %253 = vst [vmem:[%s407_s6] sm:$0x7f] %v252_v47 }
 0x267   :  { %v228_v51 = vpop.xlane.xlu1 %227 }
 0x268   :  { %v232_v53 = vmul.f32 %v291_v50, %v228_v51 }
 0x26a   :  { %v235_v54 = vmul.f32 %v234_v52, %v232_v53 }
 0x26c   :  { %241 = vperm.xlu1 %288, %v235_v54  }
 0x2eb   :  { %v242_v57 = vpop.permute.xlu1 %241 }
 0x2ec   :  { %v244_v58 = vadd.f32 %v242_v57, %v238_v56 }
 0x2ee   :  { %v250_v59 = vsel %vm249_vm8, %v244_v58, %v341_v2 }
 0x2ef   :  { %251 = vst [vmem:[%s409_s5] sm:$0x7f] %v250_v59 }

</bundles_post_ra>
